<compile_context>
chip_gen: v7x
topology: tpu7x:2x2x1
jax: 0.10.0
libtpu: 0.0.40
codegen_flags: <defaults>
</compile_context>

<pallas_src>
import jax
import jax.numpy as jnp
from jax.experimental import pallas as pl
from jax.experimental.pallas import tpu as pltpu


def _se_kernel(x_ref, w1_ref, b1_ref, w2_ref, b2_ref, o_ref):
    # x_ref: (B, C, HW)   w1: (C, S)   b1: (1, S)   w2: (S, C)   b2: (1, C)

    # Global average pool over the spatial (lane) axis, accumulated in fp32.
    pooled = jnp.mean(x_ref[...].astype(jnp.float32), axis=-1)          # (B, C)

    # squeeze 1x1 conv == matmul, + bias, ReLU activation.
    h = jnp.dot(pooled, w1_ref[...],
                preferred_element_type=jnp.float32) + b1_ref[...]       # (B, S)
    h = jnp.maximum(h, 0.0)

    # expand 1x1 conv == matmul, + bias, sigmoid.
    e = jnp.dot(h, w2_ref[...],
                preferred_element_type=jnp.float32) + b2_ref[...]       # (B, C)
    scale = jax.nn.sigmoid(e).astype(x_ref.dtype)                       # (B, C)

    # Re-read the VMEM-resident tile (don't keep it live across the MLP) and
    # apply the per-channel scale, broadcast across the spatial lanes.
    o_ref[...] = (x_ref[...] * scale[:, :, None]).astype(o_ref.dtype)


def _tpu_info():
    """(vmem_capacity_bytes, num_tensorcores) with conservative fallbacks."""
    vmem_cap = 64 * 1024 * 1024  # conservative default (v7x per-TC VMEM)
    try:
        info = pltpu.get_tpu_info()
        vmem_cap = int(getattr(info, "vmem_capacity_bytes", vmem_cap))
    except Exception:
        pass
    # Heuristic: 64 MiB/TC parts (v7x) have two TensorCores per chip;
    # 128 MiB parts (v5e/v6e) have one.
    num_cores = 2 if vmem_cap <= 64 * 1024 * 1024 else 1
    return vmem_cap, num_cores


def _pick_batch_tile(n, per_batch_bytes, data_budget_bytes, num_cores):
    """Largest divisor of n whose double-buffered in+out slabs fit the budget.

    Only on multi-TensorCore parts do we keep >= num_cores grid steps so the
    batch axis can shard across cores; single-TC parts get the full tile.
    """
    max_bt = max(1, data_budget_bytes // (4 * per_batch_bytes))
    if num_cores > 1 and n >= num_cores:
        max_bt = min(max_bt, max(1, n // num_cores))
    max_bt = min(max_bt, n)
    for d in range(int(max_bt), 0, -1):
        if n % d == 0:
            return d
    return 1


def sequential_se_trt(x_nchw, w1, b1, w2, b2):
    """x_nchw: (N, C, H, W). w1: (C, S), b1: (S,), w2: (S, C), b2: (C,).
    Returns (N, C, H, W) of the same dtype as x_nchw."""
    N, C, H, W = x_nchw.shape
    HW = H * W
    S = w1.shape[1]

    # Free, contiguous reshape — no transpose, no extra HBM pass.
    x = x_nchw.reshape(N, C, HW)
    b1_2d = b1.reshape(1, S)
    b2_2d = b2.reshape(1, C)

    vmem_cap, num_cores = _tpu_info()
    vmem_limit = (vmem_cap * 3) // 4                      # ~96 MiB v5e/v6e, ~48 MiB v7x
    data_budget = max(vmem_limit - 8 * 1024 * 1024,       # headroom for weights/scratch
                      vmem_limit // 2)

    itemsize = x.dtype.itemsize
    slab_bytes = C * HW * itemsize                        # one batch element, in OR out
    b_tile = _pick_batch_tile(N, slab_bytes, data_budget, num_cores)
    grid = (N // b_tile,)

    # Oversize-slab fallback: single-buffer x/out when even b_tile=1 cannot be
    # double-buffered within the budget (halves VMEM at some overlap cost).
    single_buffer = 4 * b_tile * slab_bytes > data_budget
    xo_kwargs = {}
    if single_buffer:
        xo_kwargs["pipeline_mode"] = pl.Buffered(1)
    # TODO(synk): if even single-buffered 2*slab exceeds the budget, split HW
    # across an "arbitrary" grid axis with a pooled accumulator (extra pass).

    weight_bytes = sum(int(a.size) * a.dtype.itemsize for a in (w1, b1_2d, w2, b2_2d))
    cost = pl.CostEstimate(
        flops=int(2 * N * C * S + 2 * N * S * C + 2 * N * C * HW),
        transcendentals=int(N * C),
        bytes_accessed=int(2 * N * slab_bytes + weight_bytes),
    )

    out = pl.pallas_call(
        _se_kernel,
        out_shape=jax.ShapeDtypeStruct((N, C, HW), x.dtype),
        grid_spec=pltpu.PrefetchScalarGridSpec(
            num_scalar_prefetch=0,
            grid=grid,
            in_specs=[
                pl.BlockSpec((b_tile, C, HW), lambda i: (i, 0, 0), **xo_kwargs),
                pl.BlockSpec((C, S), lambda i: (0, 0)),
                pl.BlockSpec((1, S), lambda i: (0, 0)),
                pl.BlockSpec((S, C), lambda i: (0, 0)),
                pl.BlockSpec((1, C), lambda i: (0, 0)),
            ],
            out_specs=pl.BlockSpec((b_tile, C, HW), lambda i: (i, 0, 0), **xo_kwargs),
        ),
        compiler_params=pltpu.CompilerParams(
            dimension_semantics=("parallel",),
            vmem_limit_bytes=int(vmem_limit)),
        cost_estimate=cost,
    )(x, w1, b1_2d, w2, b2_2d)

    return out.reshape(N, C, H, W)


def _reference(x_nchw, w1, b1, w2, b2):
    # Pure-JAX reference with identical math (NCHW, 1x1 convs as matmuls).
    pooled = jnp.mean(x_nchw.astype(jnp.float32), axis=(2, 3))   # (N, C)
    h = jnp.maximum(pooled @ w1 + b1, 0.0)                       # (N, S)
    scale = jax.nn.sigmoid(h @ w2 + b2)                          # (N, C)
    return x_nchw * scale.astype(x_nchw.dtype)[:, :, None, None]


if __name__ == "__main__":
    # Small shapes consistent with the module: batch=2, in_channels=16,
    # squeeze=4, spatial=16x16.
    N, C, S, H, W = 2, 16, 4, 16, 16

    key = jax.random.PRNGKey(0)
    kx, k1, k2, k3, k4 = jax.random.split(key, 5)

    x = jax.random.normal(kx, (N, C, H, W), dtype=jnp.float32)

    # Conv2d(C->S, 1x1) weight is (S, C, 1, 1) in PyTorch; we store its matmul
    # form (C, S). Deterministic synthetic init.
    w1 = jax.random.normal(k1, (C, S), dtype=jnp.float32) * 0.1
    b1 = jax.random.normal(k2, (S,), dtype=jnp.float32) * 0.1
    w2 = jax.random.normal(k3, (S, C), dtype=jnp.float32) * 0.1
    b2 = jax.random.normal(k4, (C,), dtype=jnp.float32) * 0.1

    out = sequential_se_trt(x, w1, b1, w2, b2)
    out = jax.block_until_ready(out)

    ref = _reference(x, w1, b1, w2, b2)
    assert out.shape == (N, C, H, W)
    assert jnp.allclose(out, ref, atol=1e-5, rtol=1e-5)

    print("KERNEL_OK")
</pallas_src>

<mosaic_0001>
module attributes {stable_mosaic.version = 11 : i64} {
  func.func @_se_kernel(%arg0: i32, %arg1: memref<1x16x256xf32, #tpu.memory_space<vmem>>, %arg2: memref<16x4xf32, #tpu.memory_space<vmem>>, %arg3: memref<1x4xf32, #tpu.memory_space<vmem>>, %arg4: memref<4x16xf32, #tpu.memory_space<vmem>>, %arg5: memref<1x16xf32, #tpu.memory_space<vmem>>, %arg6: memref<1x16x256xf32, #tpu.memory_space<vmem>>) attributes {dimension_semantics = [#tpu.dimension_semantics<parallel>], iteration_bounds = array<i64: 2>, scalar_prefetch = 0 : i64, scratch_operands = 0 : i64, tpu.core_type = #tpu.core_type<tc>, window_params = [{transform_indices = @transform_0, window_bounds = array<i64: 1, 16, 256>}, {pipeline_mode = #tpu.pipeline_mode<synchronous>, transform_indices = @transform_1, window_bounds = array<i64: 16, 4>}, {pipeline_mode = #tpu.pipeline_mode<synchronous>, transform_indices = @transform_2, window_bounds = array<i64: 1, 4>}, {pipeline_mode = #tpu.pipeline_mode<synchronous>, transform_indices = @transform_3, window_bounds = array<i64: 4, 16>}, {pipeline_mode = #tpu.pipeline_mode<synchronous>, transform_indices = @transform_4, window_bounds = array<i64: 1, 16>}, {transform_indices = @transform_5, window_bounds = array<i64: 1, 16, 256>}]} {
    %c0 = arith.constant 0 : index
    %c0_0 = arith.constant 0 : index
    %c0_1 = arith.constant 0 : index
    %0 = vector.load %arg1[%c0, %c0_0, %c0_1] : memref<1x16x256xf32, #tpu.memory_space<vmem>>, vector<1x16x256xf32>
    %cst = arith.constant dense<0.000000e+00> : vector<1x16xf32>
    %1 = vector.multi_reduction <add>, %0, %cst [2] : vector<1x16x256xf32> to vector<1x16xf32>
    %cst_2 = arith.constant 2.560000e+02 : f32
    %2 = vector.broadcast %cst_2 : f32 to vector<1x16xf32>
    %3 = arith.divf %1, %2 : vector<1x16xf32>
    %c0_3 = arith.constant 0 : index
    %c0_4 = arith.constant 0 : index
    %4 = vector.load %arg2[%c0_3, %c0_4] : memref<16x4xf32, #tpu.memory_space<vmem>>, vector<16x4xf32>
    %cst_5 = arith.constant dense<0.000000e+00> : vector<1x4xf32>
    %5 = tpu.matmul %3, %4, %cst_5 {dimension_numbers = #tpu.dot_dimension_numbers<[1], [0], [0], [1], [0, 0, 1, 1], [], []>} : vector<1x16xf32>, vector<16x4xf32>, vector<1x4xf32> -> vector<1x4xf32>
    %c0_6 = arith.constant 0 : index
    %c0_7 = arith.constant 0 : index
    %6 = vector.load %arg3[%c0_6, %c0_7] : memref<1x4xf32, #tpu.memory_space<vmem>>, vector<1x4xf32>
    %7 = arith.addf %5, %6 : vector<1x4xf32>
    %cst_8 = arith.constant 0.000000e+00 : f32
    %8 = vector.broadcast %cst_8 : f32 to vector<1x4xf32>
    %9 = arith.maximumf %7, %8 : vector<1x4xf32>
    %c0_9 = arith.constant 0 : index
    %c0_10 = arith.constant 0 : index
    %10 = vector.load %arg4[%c0_9, %c0_10] : memref<4x16xf32, #tpu.memory_space<vmem>>, vector<4x16xf32>
    %cst_11 = arith.constant dense<0.000000e+00> : vector<1x16xf32>
    %11 = tpu.matmul %9, %10, %cst_11 {dimension_numbers = #tpu.dot_dimension_numbers<[1], [0], [0], [1], [0, 0, 1, 1], [], []>} : vector<1x4xf32>, vector<4x16xf32>, vector<1x16xf32> -> vector<1x16xf32>
    %c0_12 = arith.constant 0 : index
    %c0_13 = arith.constant 0 : index
    %12 = vector.load %arg5[%c0_12, %c0_13] : memref<1x16xf32, #tpu.memory_space<vmem>>, vector<1x16xf32>
    %13 = arith.addf %11, %12 : vector<1x16xf32>
    %14 = arith.negf %13 : vector<1x16xf32>
    %15 = math.exp %14 : vector<1x16xf32>
    %cst_14 = arith.constant 1.000000e+00 : f32
    %16 = vector.broadcast %cst_14 : f32 to vector<1x16xf32>
    %17 = arith.addf %16, %15 : vector<1x16xf32>
    %18 = arith.divf %16, %17 : vector<1x16xf32>
    %c0_15 = arith.constant 0 : index
    %c0_16 = arith.constant 0 : index
    %c0_17 = arith.constant 0 : index
    %19 = vector.load %arg1[%c0_15, %c0_16, %c0_17] : memref<1x16x256xf32, #tpu.memory_space<vmem>>, vector<1x16x256xf32>
    %20 = vector.shape_cast %18 : vector<1x16xf32> to vector<1x16x1xf32>
    %21 = vector.broadcast %20 : vector<1x16x1xf32> to vector<1x16x256xf32>
    %22 = arith.mulf %19, %21 : vector<1x16x256xf32>
    %c0_18 = arith.constant 0 : index
    %c0_19 = arith.constant 0 : index
    %c0_20 = arith.constant 0 : index
    %23 = vector.load %arg6[%c0_18, %c0_19, %c0_20] : memref<1x16x256xf32, #tpu.memory_space<vmem>>, vector<1x16x256xf32>
    tpu.vector_store %arg6[%c0_18, %c0_19, %c0_20], %22 {strides = array<i32>} : memref<1x16x256xf32, #tpu.memory_space<vmem>>, vector<1x16x256xf32>,
    return
  }
  func.func @transform_0(%arg0: i32) -> (i32, i32, i32) {
    %c0_i32 = arith.constant 0 : i32
    %c0_i32_0 = arith.constant 0 : i32
    %c0_i32_1 = arith.constant 0 : i32
    return %arg0, %c0_i32, %c0_i32_0 : i32, i32, i32
  }
  func.func @transform_1(%arg0: i32) -> (i32, i32) {
    %c0_i32 = arith.constant 0 : i32
    %c0_i32_0 = arith.constant 0 : i32
    %c0_i32_1 = arith.constant 0 : i32
    return %c0_i32, %c0_i32_0 : i32, i32
  }
  func.func @transform_2(%arg0: i32) -> (i32, i32) {
    %c0_i32 = arith.constant 0 : i32
    %c0_i32_0 = arith.constant 0 : i32
    %c0_i32_1 = arith.constant 0 : i32
    return %c0_i32, %c0_i32_0 : i32, i32
  }
  func.func @transform_3(%arg0: i32) -> (i32, i32) {
    %c0_i32 = arith.constant 0 : i32
    %c0_i32_0 = arith.constant 0 : i32
    %c0_i32_1 = arith.constant 0 : i32
    return %c0_i32, %c0_i32_0 : i32, i32
  }
  func.func @transform_4(%arg0: i32) -> (i32, i32) {
    %c0_i32 = arith.constant 0 : i32
    %c0_i32_0 = arith.constant 0 : i32
    %c0_i32_1 = arith.constant 0 : i32
    return %c0_i32, %c0_i32_0 : i32, i32
  }
  func.func @transform_5(%arg0: i32) -> (i32, i32, i32) {
    %c0_i32 = arith.constant 0 : i32
    %c0_i32_0 = arith.constant 0 : i32
    %c0_i32_1 = arith.constant 0 : i32
    return %arg0, %c0_i32, %c0_i32_0 : i32, i32, i32
  }
}

</mosaic_0001>

<bundles_post_ra>
// kernel: tpu_custom_call.1
= control target key start
LH: loop header
LB: loop body
LE: loop exit
PB: predicated region body
PF: predicated region fallthrough
CT: control target
= control target key end

     0   :  { %10 = vsyncpa [#allocation3], 0  ;;  %s963_s0 = inlined_call_operand.hbm [shape: f32[2,16,256], index: 0, kind: input, shape index: {}]   ;;  %s964_s1 = inlined_call_operand.vmem [shape: f32[16,4], index: 1, kind: input, shape index: {}]   ;;  %s965_s2 = inlined_call_operand.vmem [shape: f32[1,4], index: 2, kind: input, shape index: {}]   ;;  %s966_s3 = inlined_call_operand.vmem [shape: f32[4,16], index: 3, kind: input, shape index: {}]   ;;  %s967_s4 = inlined_call_operand.vmem [shape: f32[1,16], index: 4, kind: input, shape index: {}]   ;;  %s968_s5 = inlined_call_operand.hbm [shape: f32[2,16,256], index: 5, kind: output, shape index: {}]  }
   0x1   :  { %12 = vsyncpa [#allocation3 + $0x1], 0 }
   0x2   :  { %13 = vsyncpa [#allocation4], 0 }
   0x3   :  { %15 = vsyncpa [#allocation4 + $0x1], 0  ;;  %s774_s18 = smov 0   ;;  %s776_s19 = smov 0  }
   0x4   :  { %s778_s20 = smov 0   ;;  %s780_s21 = smov 0  }
   0x5 LB: > { %s795_s22 = sadd.s32 4294967295, %s733_s21   ;;  %s540_s23 = sadd.s32 4294967294, %s733_s21   ;;  %s733_s21 = sphi %s780_s21, %s981_s21   ;;  %s729_s20 = sphi %s778_s20, %s980_s20   ;;  %s725_s19 = sphi %s776_s19, %s979_s19   ;;  %s721_s18 = sphi %s774_s18, %s978_s18  }
   0x6   : > { %s799_s24 = sadd.s32 1, %s733_s21   ;;  %s28_s25 = sadd.s32 1, %s729_s20 }
   0x7   : > { %s25_s26 = ssub.s32 %s733_s21, %s799_s24  ;;  %p35_p0 = scmp.ne.s32.totalorder %s729_s20, %s725_s19 }
   0x8   : > { %p26_p1 = scmp.eq.s32.totalorder %s25_s26, 0  ;;  %p36_p2 = scmp.eq.s32.totalorder %s733_s21, 0 }
   0x9   : > { %p41_p3 = scmp.ne.s32.totalorder %s725_s19, %s721_s18  ;;  %p42_p4 = scmp.eq.s32.totalorder %s795_s22, 0 }
   0xa   : > { %s811_s27 = scalar_select %p26_p1, %s729_s20, %s28_s25  }
   0xb   : > { %p813_p5 = por %p36_p2, %p35_p0  ;;  %p817_p6 = por %p42_p4, %p41_p3 }
   0xc   : > { %p149_p7 = scmp.eq.s32.totalorder %s795_s22, 1  ;;  %p155_p8 = scmp.eq.s32.totalorder %s540_s23, 1 }
   0xd   : > { %p592_p10 = scmp.lt.s32.totalorder %s733_s21, 2  ;;  %s187_s7 = sand.u32 1, %s729_s20  }
   0xe   : > { %p824_p11 = por %p149_p7, %p35_p0  ;;  %p828_p12 = por %p155_p8, %p41_p3 }
   0xf   : > { %s558_s8 = sshll.u32 %s733_s21, 9  ;;  %s543_s9 = sshll.u32 %s187_s7, 5 }
  0x10   : > { %s972_s30 = scalar_select %p824_p11, 1, 0 }
  0x11   : > { %s973_s6 = scalar_select %p828_p12, 1, 0 }
  0x12   : > { %s837_s12 = scalar_lea.hbm %s963_s0, %s558_s8  ;;  %s191_s13 = scalar_lea.vmem [#allocation2], %s543_s9 }
  0x13   : > { %s198_s14 = sshll.u32 %s191_s13, 4  ;;  %p841_p13 = pnand %p592_p10, %p813_p5  ;;  %s845_s14 = int_to_ptr.vmem [resolvable:$true] %s198_s14 }
  0x14   : > { %s847_s16 = scalar_lea.sflag [#allocation3], %s187_s7  ;;  %s637_s17 = scalar_lea.hbm %s837_s12, 512 }
  0x15   : > { %p638_p0 = scmp.ne.s32.totalorder %s837_s12, %s637_s17  ;;  %p639_p1 = pneg %p841_p13 }
  0x16   : > { %s642_s26 = scalar_lea.hbm %s963_s0, 1024  ;;  %p643_p4 = scmp.lt.u32.totalorder %s837_s12, %s963_s0 }
  0x17   : > { %p640_p2 = pnand %p639_p1, %p638_p0  ;;  %p644_p5 = scmp.lt.u32.totalorder %s642_s26, %s637_s17 }
  0x18   : > { %p646_p8 = scmp.lt.u32.totalorder %s637_s17, %s837_s12 }
  0x19   : > { %p641_p3 = pneg %p640_p2  ;;  %p645_p7 = por %p644_p5, %p643_p4 }
  0x1b   : > { %p647_p10 = por %p646_p8, %p645_p7 }
  0x1d   : > { %p648_p9 = pnand %p647_p10, %p641_p3 }
  0x1f   : > { %651 = shalt.err (!%p648_p9)
}
  0x20   : > { %s652_s7 = scalar_lea.vmem %s845_s14, 512  ;;  %s735_s9 = smov [#allocation2]  }
  0x21   : > { %p653_p0 = scmp.ne.s32.totalorder %s845_s14, %s652_s7  ;;  %s657_s10 = sshll.u32 %s735_s9, 4  ;;  %s658_s10 = int_to_ptr.vmem [resolvable:$false] %s657_s10 }
  0x22   : > { %s659_s11 = scalar_lea.vmem %s658_s10, 1024  ;;  %p660_p11 = scmp.lt.s32.totalorder %s845_s14, %s658_s10 }
  0x23   : > { %p655_p2 = pnand %p653_p0, %p639_p1  ;;  %p661_p4 = scmp.lt.s32.totalorder %s659_s11, %s652_s7 }
  0x25   : > { %p656_p12 = pneg %p655_p2  ;;  %p662_p5 = por %p661_p4, %p660_p11 }
  0x27   : > { %p663_p7 = pnand %p662_p5, %p656_p12 }
  0x29   : > { %666 = shalt.err (!%p663_p7)
}
  0x2a   : > { %s736_s13 = smov 256   ;;  %s737_s17 = smov 16  }
  0x2b   : > { %587 = dma.hbm_to_vmem [thread:$0]  (!%p841_p13), %s837_s12, 512, %s845_s14, %s847_s16, %s736_s13, %s736_s13, %s737_s17  }
  0x2c   : > { %p546_p9 = scmp.ge.s32.totalorder %s733_s21, 1  ;;  %p206_p1 = scmp.lt.s32.totalorder %s733_s21, 3 }
  0x2e   : > { %p207_p3 = pnand %p546_p9, %p206_p1 }
  0x2f   : > { %s878_s23 = sand.u32 (!%p207_p3), 1, %s725_s19  }
  0x30   : > { %210 = sbr.rel (%p207_p3) target bundleno = 804 (0x324), region = 40  ;;  %s547_s25 = sshll.u32 (!%p207_p3), %s878_s23, 5 }
  0x31   : > { %s213_s26 = scalar_lea.sflag (!%p207_p3), [#allocation3], %s878_s23  ;;  %s216_s28 = scalar_lea.vmem (!%p207_p3), [#allocation2], %s547_s25 }
  0x37   : > { %712 = dma.done.wait (%p817_p6), %s213_s26, 512  }
  0x38   : > { %714 = vsyncadd (%p817_p6), %s213_s26, 4294966784  ;;  %v243_v0 = vld [vmem:[%s216_s28] sm:$0xff]  ;;  %v244_v1 = vld [vmem:[%s216_s28 + $0x8] sm:$0xff]  ;;  %v738_v9 = vmov 0.0|0.0   ;;  %vm739_vm0 = vmmov 0   ;;  %v740_v10 = vmov 0.0   ;;  %v261_v11 = vlaneseq }
  0x39   : > { %v888_v2 = vld [vmem:[%s216_s28 + $0x10] sm:$0xff]  ;;  %v247_v3 = vadd.f32 %v244_v1, %v243_v0  ;;  %v890_v4 = vld [vmem:[%s216_s28 + $0x18] sm:$0xff]  ;;  %v256_v6 = vld [vmem:[%s964_s1] sm:$0xff]  ;;  %577 = vmatprep.subr.bf16.mxu0 %v738_v9  ;;  %569 = vmatprep.mubr.msk.f32.mxu0 %vm739_vm0, %v740_v10  ;;  %vm272_vm1 = vcmask 130112   ;;  %vm274_vm2 = vcmask 130048   ;;  %vm354_vm3 = vcmask 1043456  }
  0x3a   : > { %v250_v5 = vadd.f32 %v890_v4, %v888_v2  ;;  %v257_v7 = vld [vmem:[%s964_s1 + $0x8] sm:$0xff]  ;;  %572 = vmatprep.subr.mxu1 %v740_v10  ;;  %574 = vmatprep.mubr.msk.f32.mxu1 %vm739_vm0, %v740_v10  ;;  %v262_v12 = vand.u32 127, %v261_v11  ;;  %v264_v13 = vshrl.u32 %v261_v11, 7  ;;  %v348_v24 = vld [vmem:[%s966_s3] sm:$0xf]  ;;  %vm350_vm4 = vcmask 31744  }
  0x3b   : > { %248 = vadd.xlane.f32.xlu0 %v247_v3  ;;  %v578_v8 = vpack.c.bf16 %v257_v7, %v256_v6  ;;  %573 = vmatpush3.msk.msra.mxu1 %vm354_vm3, %v348_v24  ;;  %v258_v25 = vld [vmem:[%s965_s2] sm:$0x1]  ;;  %s242_s13 = scalar_lea.vmem [#allocation5], %s547_s25  ;;  %s559_s26 = sshll.u32 %s795_s22, 9 }
  0x3c   : > { %v267_v14 = vadd.s32 4294967288, %v262_v12  ;;  %v265_v16 = vsub.s32 %v262_v12, %v264_v13  ;;  %v349_v30 = vld [vmem:[%s967_s4] sm:$0x1]  ;;  %v436_v37 = vsub.s32 0, %v264_v13  ;;  %s467_s17 = sshll.u32 %s242_s13, 4  ;;  %s917_s14 = scalar_lea.hbm %s968_s5, %s559_s26  ;;  %s912_s17 = int_to_ptr.vmem [resolvable:$true] %s467_s17 }
  0x3d   : > { %579 = vmatpush3.bf16.msra.mxu0 %v578_v8  ;;  %s454_s22 = scalar_lea.sflag [#allocation4], %s878_s23  ;;  %s667_s25 = scalar_lea.vmem %s912_s17, 512 }
  0x3e   : > { %v270_v18 = vsub.s32 %v267_v14, %v264_v13  ;;  %p668_p6 = scmp.ne.s32.totalorder %s912_s17, %s667_s25  ;;  %p975_p11 = scmp.ne.s32.totalorder %s972_s30, 0 }
  0x3f   : > { %251 = vadd.xlane.f32.xlu0 %v250_v5  ;;  %s741_s15 = smov [#allocation5]  }
  0x40   : > { %p669_p12 = pnand %p668_p6, %p975_p11  ;;  %s671_s16 = sshll.u32 %s741_s15, 4  ;;  %s672_s16 = int_to_ptr.vmem [resolvable:$false] %s671_s16 }
  0x41   : > { %s673_s29 = scalar_lea.vmem %s672_s16, 1024  ;;  %p674_p8 = scmp.lt.s32.totalorder %s912_s17, %s672_s16 }
  0x42   : > { %p670_p13 = pneg %p669_p12  ;;  %p675_p10 = scmp.lt.s32.totalorder %s673_s29, %s667_s25 }
  0x44   : > { %p676_p0 = por %p675_p10, %p674_p8 }
  0x46   : > { %p677_p2 = pnand %p676_p0, %p670_p13 }
  0xc8   : > { %v249_v15 = vpop.xlane.xlu0 %248 }
  0xc9   : > { %v254_v17 = vmul.f32 0.00390625, %v249_v15 }
  0xcb   : > { %v266_v21 = vrot.slane %v254_v17, %v265_v16 }
  0xcc   : > { %v252_v19 = vpop.xlane.xlu0 %251 }
  0xcd   : > { %v255_v20 = vmul.f32 0.00390625, %v252_v19 }
  0xcf   : > { %v271_v22 = vrot.slane %v255_v20, %v270_v18 }
  0xd1   : > { %v273_v23 = vsel %vm272_vm1, %v271_v22, %v266_v21 }
  0xd2   : > { %570 = vmatmul.mubr.msk.f32.vlgmr.msra.gmra.mrb[0].mxu0 %vm274_vm2, %v273_v23 }
 0x1a5   : > { %v343_v26 = vpop.f32.mrb[0].mxu0 }
 0x1a6   : > { %v344_v27 = vadd.f32 %v343_v26, %v258_v25  ;;  %v571_v28 = vpop.f32.mrb[1].mxu0 }
 0x1a8   : > { %v347_v29 = vmax.f32 %v344_v27, 0.0 }
 0x1aa   : > { %575 = vmatmul.mubr.msk.f32.vlgmr.msra.gmra.mrb[0].mxu1 %vm350_vm4, %v347_v29 }
 0x27d   : > { %v424_v31 = vpop.f32.mrb[0].mxu1 }
 0x27e   : > { %v425_v32 = vadd.f32 %v424_v31, %v349_v30  ;;  %v576_v33 = vpop.f32.mrb[1].mxu1 }
 0x280   : > { %v552_v34 = vmul.f32 -1.442695, %v425_v32 }
 0x282   : > { %633 = vpow2.f32 %v552_v34 }
 0x28c   : > { %v634_v35 = vpop.eup %633 }
 0x28d   : > { %v431_v36 = vadd.f32 1.0, %v634_v35 }
 0x28f   : > { %635 = vrcp.f32 %v431_v36 }
 0x299   : > { %v636_v38 = vpop.eup %635 }
 0x29a   : > { %v437_v39 = vrot.slane %v636_v38, %v436_v37 }
 0x29c   : > { %439 = vbcast.lane.b32.xlu1 %v437_v39, 256 }
 0x2a0   : > { %443 = vbcast.lane.b32.xlu1 %v437_v39, 264 }
 0x30e   : > { %v440_v40 = vpop.permute.xlu1 %439 }
 0x30f   : > { %v445_v41 = vmul.f32 %v440_v40, %v243_v0  ;;  %v446_v42 = vmul.f32 %v440_v40, %v244_v1 }
 0x311   : > { %449 = vst [vmem:[%s242_s13] sm:$0xff] %v445_v41  ;;  %450 = vst [vmem:[%s242_s13 + $0x8] sm:$0xff] %v446_v42 }
 0x312   : > { %v444_v43 = vpop.permute.xlu1 %443 }
 0x313   : > { %v447_v44 = vmul.f32 %v444_v43, %v888_v2  ;;  %v448_v45 = vmul.f32 %v444_v43, %v890_v4 }
 0x315   : > { %451 = vst [vmem:[%s242_s13 + $0x10] sm:$0xff] %v447_v44  ;;  %452 = vst [vmem:[%s242_s13 + $0x18] sm:$0xff] %v448_v45 }
 0x316   : > { %680 = shalt.err (!%p677_p2)
}
 0x317   : > { %s681_s8 = scalar_lea.hbm %s917_s14, 512  ;;  %s685_s10 = scalar_lea.hbm %s968_s5, 1024 }
 0x318   : > { %p682_p4 = scmp.ne.s32.totalorder %s917_s14, %s681_s8  ;;  %p686_p9 = scmp.lt.u32.totalorder %s917_s14, %s968_s5 }
 0x319   : > { %p687_p1 = scmp.lt.u32.totalorder %s685_s10, %s681_s8  ;;  %p689_p6 = scmp.lt.u32.totalorder %s681_s8, %s917_s14 }
 0x31a   : > { %p683_p5 = pnand %p682_p4, %p975_p11 }
 0x31b   : > { %p688_p3 = por %p687_p1, %p686_p9 }
 0x31c   : > { %p684_p7 = pneg %p683_p5 }
 0x31d   : > { %p690_p12 = por %p689_p6, %p688_p3 }
 0x31f   : > { %p691_p13 = pnand %p690_p12, %p684_p7 }
 0x321   : > { %694 = shalt.err (!%p691_p13)
}
 0x322   : > { %s742_s26 = smov 256   ;;  %s743_s28 = smov 16  }
 0x323   : > { %582 = dma.vmem_to_hbm [thread:$0]  (%p975_p11), %s912_s17, 512, %s917_s14, %s454_s22, %s742_s26, %s742_s26, %s743_s28  }
 0x324 PF: > { %s482_s12 = sand.u32 1, %s721_s18   ;;  %p976_p8 = scmp.ne.s32.totalorder %s973_s6, 0 }
 0x325   : > { %p977_p10 = scmp.ge.s32.totalorder %s733_s21, 2  ;;  %s483_s25 = scalar_lea.sflag [#allocation4], %s482_s12 }
 0x327   : > { %p589_p0 = pnand %p977_p10, %p976_p8 }
 0x329   : > { %716 = dma.done.wait (!%p589_p0), %s483_s25, 512  }
 0x32a   : > { %718 = vsyncadd (!%p589_p0), %s483_s25, 4294966784  ;;  %p18_p2 = scmp.ge.s32.totalorder %s799_s24, 4   ;;  %s978_s18 = smov %s725_s19 }
 0x32b   : > { %s979_s19 = smov %s729_s20  ;;  %s980_s20 = smov %s811_s27 }
 0x32c   : > { %s981_s21 = smov %s799_s24  ;;  %20 = sbr.rel (!%p18_p2) target bundleno = 5 (0x5), region = 85 }
 0x333   :  { %488 = vsyncpa [#allocation3], 1 }
 0x334   :  { %490 = vsyncpa [#allocation3 + $0x1], 1 }
 0x335   :  { %491 = vsyncpa [#allocation4], 1 }
 0x336   :  { %493 = vsyncpa [#allocation4 + $0x1], 1 }

</bundles_post_ra>
